<compile_context>
chip_gen: v5e
topology: v5e:2x2
jax: 0.10.0
libtpu: 0.0.40
codegen_flags: <defaults>
</compile_context>

<pallas_src>
import functools

import jax
import jax.numpy as jnp
from jax.experimental import pallas as pl
from jax.experimental.pallas import tpu as pltpu

LEAKY_SLOPE = 0.01  # PyTorch nn.LeakyReLU default negative_slope


def _mlp_kernel(*refs, relu_flags):
    """Fused MLP forward.

    refs = (x_ref, w0_ref, b0_ref, w1_ref, b1_ref, ..., o_ref)
    Matmuls hit the MXU with f32 accumulation; bias add + LeakyReLU are VPU
    elementwise in f32.  Intermediates stay in vregs — nothing touches HBM
    between layers.
    """
    x_ref = refs[0]
    o_ref = refs[-1]
    param_refs = refs[1:-1]

    h = x_ref[...]
    for i, relu in enumerate(relu_flags):
        w = param_refs[2 * i][...]
        b = param_refs[2 * i + 1][...]  # (1, N), broadcasts over batch rows
        h = jnp.dot(h, w, preferred_element_type=jnp.float32)
        h = h + b.astype(jnp.float32)
        if relu:
            # LeakyReLU(y) == max(y, slope*y) for 0 < slope < 1 (mul + max).
            h = jnp.maximum(h, LEAKY_SLOPE * h)
    o_ref[...] = h.astype(o_ref.dtype)


def mlp_forward(x, params_flat, *, relu_flags, batch_block=512):
    """Run the full MLP as one fused Pallas kernel.

    x: [B, K0]; params_flat: (W_0, b_0, W_1, b_1, ...) with W_i [K_i, N_i]
    (already transposed to in-major) and b_i [1, N_i].  Returns [B, N_last].
    """
    relu_flags = tuple(relu_flags)
    params_flat = tuple(params_flat)
    B, K0 = x.shape
    n_layers = len(relu_flags)
    n_out = params_flat[2 * (n_layers - 1)].shape[1]

    # Advisory cost for XLA's scheduler around the custom call.
    flops = 0
    bytes_accessed = x.size * x.dtype.itemsize + B * n_out * x.dtype.itemsize
    for i in range(n_layers):
        w = params_flat[2 * i]
        b = params_flat[2 * i + 1]
        flops += 2 * B * w.shape[0] * w.shape[1]
        bytes_accessed += w.size * w.dtype.itemsize + b.size * b.dtype.itemsize
    cost = pl.CostEstimate(flops=flops, bytes_accessed=bytes_accessed,
                           transcendentals=0)

    kernel = functools.partial(_mlp_kernel, relu_flags=relu_flags)
    out_shape = jax.ShapeDtypeStruct((B, n_out), x.dtype)

    # Large replay batches: tile the batch dim over a "parallel" grid axis
    # (splits across v7x's two TensorCores); params keep constant block
    # indices so they stay VMEM-resident across grid steps.
    use_grid = (B > batch_block) and (B % batch_block == 0)

    if not use_grid:
        # Tiny-batch (acting) path: single block, zero grid, one launch.
        in_specs = [pl.BlockSpec(x.shape, lambda: (0, 0))]
        in_specs += [pl.BlockSpec(a.shape, lambda: (0, 0)) for a in params_flat]
        out_specs = pl.BlockSpec((B, n_out), lambda: (0, 0))
        return pl.pallas_call(
            kernel,
            out_shape=out_shape,
            in_specs=in_specs,
            out_specs=out_specs,
            cost_estimate=cost,
        )(x, *params_flat)

    grid = (B // batch_block,)
    in_specs = [pl.BlockSpec((batch_block, K0), lambda i: (i, 0))]
    in_specs += [pl.BlockSpec(a.shape, lambda i: (0, 0)) for a in params_flat]
    out_specs = pl.BlockSpec((batch_block, n_out), lambda i: (i, 0))
    return pl.pallas_call(
        kernel,
        out_shape=out_shape,
        grid=grid,
        in_specs=in_specs,
        out_specs=out_specs,
        cost_estimate=cost,
        compiler_params=pltpu.CompilerParams(
            dimension_semantics=("parallel",)),
    )(x, *params_flat)


class MLPPallas:
    """Mirror of the PyTorch MLP module's forward pass (single fused kernel)."""

    def __init__(self, input_layer_size, hidden_layers, last_relu=False,
                 key=None, param_dtype=jnp.float32):
        if key is None:
            key = jax.random.PRNGKey(0)
        sizes = [input_layer_size] + list(hidden_layers)
        n_layers = len(hidden_layers)

        # Params stored exactly as the kernel consumes them: W [in, out] in
        # param_dtype (bf16 halves DMA bytes on v6e/v7x), b [1, out] in f32.
        self.params_flat = []
        self.relu_flags = []
        for i in range(n_layers):
            fan_in, fan_out = sizes[i], sizes[i + 1]
            key, kw, kb = jax.random.split(key, 3)
            bound = 1.0 / (fan_in ** 0.5)  # PyTorch-style uniform init bound
            w = jax.random.uniform(kw, (fan_in, fan_out), jnp.float32,
                                   -bound, bound).astype(param_dtype)
            b = jax.random.uniform(kb, (1, fan_out), jnp.float32, -bound, bound)
            self.params_flat.append(w)
            self.params_flat.append(b)
            # Matches the PyTorch module exactly:
            #   - single-hidden-layer net: LeakyReLU after it regardless.
            #   - otherwise: LeakyReLU after every layer except the last,
            #     and after the last too iff last_relu.
            if n_layers == 1:
                relu = True
            else:
                relu = (i < n_layers - 1) or last_relu
            self.relu_flags.append(relu)

        self.params_flat = tuple(self.params_flat)
        self._forward = jax.jit(
            functools.partial(mlp_forward, relu_flags=tuple(self.relu_flags))
        )

    def __call__(self, x):
        return self._forward(x, self.params_flat)


if __name__ == "__main__":
    key = jax.random.PRNGKey(0)
    key_x, key_p = jax.random.split(key)

    batch = 2
    input_layer_size = 32
    hidden_layers = [64, 32, 8]

    x = jax.random.normal(key_x, (batch, input_layer_size), jnp.float32)

    model = MLPPallas(input_layer_size, hidden_layers, last_relu=False, key=key_p)
    out = model(x)
    out = jax.block_until_ready(out)

    # Reference check in plain JAX (same params, same layout).
    ref = x
    for i, relu in enumerate(model.relu_flags):
        w = model.params_flat[2 * i].astype(jnp.float32)
        b = model.params_flat[2 * i + 1]
        ref = ref @ w + b
        if relu:
            ref = jnp.where(ref > 0, ref, LEAKY_SLOPE * ref)

    assert out.shape == (batch, hidden_layers[-1])
    assert jnp.allclose(out, ref, atol=1e-5, rtol=1e-5)

    print("KERNEL_OK")
</pallas_src>

<mosaic_0001>
module attributes {stable_mosaic.version = 11 : i64} {
  func.func @_mlp_kernel(%arg0: memref<2x32xf32, #tpu.memory_space<vmem>>, %arg1: memref<32x64xf32, #tpu.memory_space<vmem>>, %arg2: memref<1x64xf32, #tpu.memory_space<vmem>>, %arg3: memref<64x32xf32, #tpu.memory_space<vmem>>, %arg4: memref<1x32xf32, #tpu.memory_space<vmem>>, %arg5: memref<32x8xf32, #tpu.memory_space<vmem>>, %arg6: memref<1x8xf32, #tpu.memory_space<vmem>>, %arg7: memref<2x8xf32, #tpu.memory_space<vmem>>) attributes {dimension_semantics = [], scalar_prefetch = 0 : i64, scratch_operands = 0 : i64, tpu.core_type = #tpu.core_type<tc>} {
    %c0 = arith.constant 0 : index
    %c0_0 = arith.constant 0 : index
    %0 = vector.load %arg0[%c0, %c0_0] : memref<2x32xf32, #tpu.memory_space<vmem>>, vector<2x32xf32>
    %c0_1 = arith.constant 0 : index
    %c0_2 = arith.constant 0 : index
    %1 = vector.load %arg1[%c0_1, %c0_2] : memref<32x64xf32, #tpu.memory_space<vmem>>, vector<32x64xf32>
    %c0_3 = arith.constant 0 : index
    %c0_4 = arith.constant 0 : index
    %2 = vector.load %arg2[%c0_3, %c0_4] : memref<1x64xf32, #tpu.memory_space<vmem>>, vector<1x64xf32>
    %cst = arith.constant dense<0.000000e+00> : vector<2x64xf32>
    %3 = tpu.matmul %0, %1, %cst {dimension_numbers = #tpu.dot_dimension_numbers<[1], [0], [0], [1], [0, 0, 1, 1], [], []>} : vector<2x32xf32>, vector<32x64xf32>, vector<2x64xf32> -> vector<2x64xf32>
    %4 = vector.broadcast %2 : vector<1x64xf32> to vector<2x64xf32>
    %5 = arith.addf %3, %4 : vector<2x64xf32>
    %cst_5 = arith.constant 0.00999999977 : f32
    %6 = vector.broadcast %cst_5 : f32 to vector<2x64xf32>
    %7 = arith.mulf %6, %5 : vector<2x64xf32>
    %8 = arith.maximumf %5, %7 : vector<2x64xf32>
    %c0_6 = arith.constant 0 : index
    %c0_7 = arith.constant 0 : index
    %9 = vector.load %arg3[%c0_6, %c0_7] : memref<64x32xf32, #tpu.memory_space<vmem>>, vector<64x32xf32>
    %c0_8 = arith.constant 0 : index
    %c0_9 = arith.constant 0 : index
    %10 = vector.load %arg4[%c0_8, %c0_9] : memref<1x32xf32, #tpu.memory_space<vmem>>, vector<1x32xf32>
    %cst_10 = arith.constant dense<0.000000e+00> : vector<2x32xf32>
    %11 = tpu.matmul %8, %9, %cst_10 {dimension_numbers = #tpu.dot_dimension_numbers<[1], [0], [0], [1], [0, 0, 1, 1], [], []>} : vector<2x64xf32>, vector<64x32xf32>, vector<2x32xf32> -> vector<2x32xf32>
    %12 = vector.broadcast %10 : vector<1x32xf32> to vector<2x32xf32>
    %13 = arith.addf %11, %12 : vector<2x32xf32>
    %cst_11 = arith.constant 0.00999999977 : f32
    %14 = vector.broadcast %cst_11 : f32 to vector<2x32xf32>
    %15 = arith.mulf %14, %13 : vector<2x32xf32>
    %16 = arith.maximumf %13, %15 : vector<2x32xf32>
    %c0_12 = arith.constant 0 : index
    %c0_13 = arith.constant 0 : index
    %17 = vector.load %arg5[%c0_12, %c0_13] : memref<32x8xf32, #tpu.memory_space<vmem>>, vector<32x8xf32>
    %c0_14 = arith.constant 0 : index
    %c0_15 = arith.constant 0 : index
    %18 = vector.load %arg6[%c0_14, %c0_15] : memref<1x8xf32, #tpu.memory_space<vmem>>, vector<1x8xf32>
    %cst_16 = arith.constant dense<0.000000e+00> : vector<2x8xf32>
    %19 = tpu.matmul %16, %17, %cst_16 {dimension_numbers = #tpu.dot_dimension_numbers<[1], [0], [0], [1], [0, 0, 1, 1], [], []>} : vector<2x32xf32>, vector<32x8xf32>, vector<2x8xf32> -> vector<2x8xf32>
    %20 = vector.broadcast %18 : vector<1x8xf32> to vector<2x8xf32>
    %21 = arith.addf %19, %20 : vector<2x8xf32>
    %c0_17 = arith.constant 0 : index
    %c0_18 = arith.constant 0 : index
    %22 = vector.load %arg7[%c0_17, %c0_18] : memref<2x8xf32, #tpu.memory_space<vmem>>, vector<2x8xf32>
    tpu.vector_store %arg7[%c0_17, %c0_18], %21 {strides = array<i32>} : memref<2x8xf32, #tpu.memory_space<vmem>>, vector<2x8xf32>,
    return
  }
}

</mosaic_0001>

<bundles_post_ra>
// kernel: mlp_forward.1
= control target key start
LH: loop header
LB: loop body
LE: loop exit
PB: predicated region body
PF: predicated region fallthrough
CT: control target
= control target key end

     0   :  { %s288_s0 = inlined_call_operand.vmem [shape: f32[2,32], index: 0, kind: input, shape index: {}]   ;;  %s289_s1 = inlined_call_operand.vmem [shape: f32[32,64], index: 1, kind: input, shape index: {}]   ;;  %s290_s2 = inlined_call_operand.vmem [shape: f32[1,64], index: 2, kind: input, shape index: {}]   ;;  %s291_s3 = inlined_call_operand.vmem [shape: f32[64,32], index: 3, kind: input, shape index: {}]   ;;  %s292_s4 = inlined_call_operand.vmem [shape: f32[1,32], index: 4, kind: input, shape index: {}]   ;;  %s293_s5 = inlined_call_operand.vmem [shape: f32[32,8], index: 5, kind: input, shape index: {}]   ;;  %s294_s6 = inlined_call_operand.vmem [shape: f32[1,8], index: 6, kind: input, shape index: {}]   ;;  %s295_s7 = inlined_call_operand.hbm [shape: f32[2,8], index: 7, kind: output, shape index: {}]  }
   0x1   :  { %v31_v0 = vld [vmem:[%s289_s1 + $0x18] sm:$0xff]  ;;  %v30_v1 = vld [vmem:[%s289_s1 + $0x10] sm:$0xff]  ;;  %v29_v3 = vld [vmem:[%s289_s1 + $0x8] sm:$0xff] }
   0x2   :  { %52 = vmatpush.msra.mxu0 %v31_v0  ;;  %v69_v2 = vld [vmem:[%s291_s3 + $0x38] sm:$0xff]  ;;  %v68_v4 = vld [vmem:[%s291_s3 + $0x30] sm:$0xff]  ;;  %v67_v5 = vld [vmem:[%s291_s3 + $0x28] sm:$0xff] }
   0x3   :  { %86 = vmatpush.msra.mxu1 %v69_v2  ;;  %v28_v6 = vld [vmem:[%s289_s1] sm:$0xff] }
   0x4   :  { %53 = vmatpush.msra.mxu0 %v30_v1 }
   0x5   :  { %87 = vmatpush.msra.mxu1 %v68_v4 }
   0x6   :  { %12 = vsyncpa [#allocation3], 0  ;;  %54 = vmatpush.msra.mxu0 %v29_v3  ;;  %v27_v7 = vld [vmem:[%s288_s0] sm:$0x3]  ;;  %vm36_vm0 = vcmask 261120   ;;  %v65_v9 = vld [vmem:[%s291_s3 + $0x18] sm:$0xff] }
   0x7   :  { %v66_v8 = vld [vmem:[%s291_s3 + $0x20] sm:$0xff]  ;;  %88 = vmatpush.msra.mxu1 %v67_v5  ;;  %v64_v10 = vld [vmem:[%s291_s3 + $0x10] sm:$0xff]  ;;  %v63_v11 = vld [vmem:[%s291_s3 + $0x8] sm:$0xff]  ;;  %vm74_vm1 = vcmask 523264   ;;  %s182_s14 = smov [#allocation2]   ;;  %vm131_vm2 = vcmask 58368  }
   0x8   :  { %55 = vmatpush.msra.mxu0 %v28_v6  ;;  %v62_v12 = vld [vmem:[%s291_s3] sm:$0xff]  ;;  %v103_v18 = vld [vmem:[%s293_s5 + $0x18] sm:$0xff]  ;;  %v102_v19 = vld [vmem:[%s293_s5 + $0x10] sm:$0xff]  ;;  %s138_s15 = sshll.u32 %s182_s14, 4  ;;  %s139_s15 = int_to_ptr.vmem [resolvable:$true] %s138_s15 }
   0x9   :  { %149 = vmatmul.msk.f32.vlgmr.msra.gmra.mxu0 %vm36_vm0, %v27_v7  ;;  %89 = vmatpush.msra.mxu1 %v66_v8  ;;  %v153_v13 = vld [vmem:[%s290_s2] ss:$0 sm:$0xff]  ;;  %v101_v20 = vld [vmem:[%s293_s5 + $0x8] sm:$0xff] }
   0xa   :  { %123 = vmatpush.msra.mxu2 %v103_v18  ;;  %v100_v21 = vld [vmem:[%s293_s5] sm:$0xff]  ;;  %s140_s5 = sshll.u32 %s295_s7, 4  ;;  %s141_s5 = int_to_ptr.hbm [resolvable:$true] %s140_s5 }
   0xb   :  { %90 = vmatpush.msra.mxu1 %v65_v9  ;;  %v154_v22 = vld [vmem:[%s292_s4] ss:$0 sm:$0xff] }
   0xc   :  { %124 = vmatpush.msra.mxu2 %v102_v19  ;;  %v155_v27 = vld [vmem:[%s294_s6] ss:$0 sm:$0xff] }
   0xd   :  { %91 = vmatpush.msra.mxu1 %v64_v10 }
   0xe   :  { %125 = vmatpush.msra.mxu2 %v101_v20 }
   0xf   :  { %92 = vmatpush.msra.mxu1 %v63_v11 }
  0x10   :  { %126 = vmatpush.msra.mxu2 %v100_v21 }
  0x11   :  { %93 = vmatpush.msra.mxu1 %v62_v12 }
  0x86   :  { %v57_v14 = vpop.f32.mrf.mxu0 }
  0x87   :  { %v58_v15 = vadd.f32 %v153_v13, %v57_v14 }
  0x89   :  { %v60_v16 = vmul.f32 0.01, %v58_v15 }
  0x8b   :  { %v61_v17 = vmax.f32 %v58_v15, %v60_v16 }
  0x8d   :  { %150 = vmatmul.msk.f32.vlgmr.msra.gmra.mxu1 %vm74_vm1, %v61_v17 }
 0x10a   :  { %v95_v23 = vpop.f32.mrf.mxu1 }
 0x10b   :  { %v96_v24 = vadd.f32 %v154_v22, %v95_v23 }
 0x10d   :  { %v98_v25 = vmul.f32 0.01, %v96_v24 }
 0x10f   :  { %v99_v26 = vmax.f32 %v96_v24, %v98_v25 }
 0x111   :  { %151 = vmatmul.msk.f32.vlgmr.msra.gmra.mxu2 %vm36_vm0, %v99_v26 }
 0x194   :  { %v128_v28 = vpop.f32.mrf.mxu2 }
 0x195   :  { %v129_v29 = vadd.f32 %v155_v27, %v128_v28 }
 0x197   :  { %132 = vst.msk [vmem:[#allocation2] sm:$0x3] %vm131_vm2, %v129_v29 }
 0x198   :  { %143 = dma.vmem_to_hbm [thread:$0]  %s139_s15, 32, %s141_s5, [#allocation3]  }
 0x199   :  { %180 = dma.done.wait [#allocation3], 32  }
 0x19a   :  { %181 = vsyncadd [#allocation3], 4294967264 }
 0x19b   :  { %148 = vsyncpa [#allocation3], 1 }

</bundles_post_ra>
